<compile_context>
chip_gen: v6e
topology: v6e:2x2x1
jax: 0.10.0
libtpu: 0.0.40
codegen_flags: <defaults>
</compile_context>

<pallas_src>
import functools

import jax
import jax.numpy as jnp
from jax.experimental import pallas as pl
from jax.experimental.pallas import tpu as pltpu


def _round_up(x, m):
    return ((x + m - 1) // m) * m


# ----------------------------------------------------------------------------
# Glue: 4-point parameterization -> 3x3 homography (row-major 9-vector).
# Mirrors homography_mat_from_4_pts() in the PyTorch reference.
# ----------------------------------------------------------------------------
def homography_mat_from_4_pts(theta):
    b = theta.shape[0]
    theta = theta.reshape(b, 8).astype(jnp.float32)
    xp = theta[:, :4, None]                              # (b, 4, 1)
    yp = theta[:, 4:, None]                              # (b, 4, 1)
    x = jnp.broadcast_to(jnp.array([-1., -1., 1., 1.], jnp.float32)[None, :, None], (b, 4, 1))
    y = jnp.broadcast_to(jnp.array([-1., 1., -1., 1.], jnp.float32)[None, :, None], (b, 4, 1))
    z = jnp.zeros((b, 4, 1), jnp.float32)
    o = jnp.ones((b, 4, 1), jnp.float32)
    A_top = jnp.concatenate([-x, -y, -o, z, z, z, x * xp, y * xp, xp], axis=2)   # (b, 4, 9)
    A_bot = jnp.concatenate([z, z, z, -x, -y, -o, x * yp, y * yp, yp], axis=2)   # (b, 4, 9)
    A = jnp.concatenate([A_top, A_bot], axis=1)                                  # (b, 8, 9)
    h = jnp.linalg.solve(A[:, :, :8], -A[:, :, 8:9])                             # (b, 8, 1)
    H = jnp.concatenate([h[:, :, 0], jnp.ones((b, 1), jnp.float32)], axis=1)     # (b, 9)
    return H


# ----------------------------------------------------------------------------
# Pallas kernel: projective warp producing the interleaved [x', y'] layout.
#   h_ref   : (bt, 1, 9)          f32  -- homography coefficients per batch
#   gxy_ref : (2, two_hw_tile)    f32  -- base grid, each pixel's (gx, gy)
#                                         duplicated onto its two lanes
#   out_ref : (bt, two_hw_tile)   f32  -- lane 2p -> X'(p), lane 2p+1 -> Y'(p)
# ----------------------------------------------------------------------------
def _homo_grid_kernel(h_ref, gxy_ref, out_ref):
    h = h_ref[:, 0, :]                 # (bt, 9)
    gx = gxy_ref[0:1, :]               # (1, T) pixel x-coord on both of its lanes
    gy = gxy_ref[1:2, :]               # (1, T) pixel y-coord on both of its lanes

    # Lane parity selects the output channel (tile offsets are multiples of
    # 128, so local parity == global parity).
    lane = jax.lax.broadcasted_iota(jnp.int32, gx.shape, 1)     # (1, T)
    is_x = (lane & 1) == 0                                      # even lane -> X'

    h0 = h[:, 0:1]; h1 = h[:, 1:2]; h2 = h[:, 2:3]
    h3 = h[:, 3:4]; h4 = h[:, 4:5]; h5 = h[:, 5:6]
    h6 = h[:, 6:7]; h7 = h[:, 7:8]; h8 = h[:, 8:9]

    # Per-lane affine coefficients: (h0,h1,h2) on x-lanes, (h3,h4,h5) on y-lanes.
    ha = jnp.where(is_x, h0, h3)       # (bt, T)
    hb = jnp.where(is_x, h1, h4)
    hc = jnp.where(is_x, h2, h5)

    # Projective denominator; EUP approximate reciprocal + one Newton step
    # (error ~ e^2 of the approximation -> well within f32 for this use).
    k = gx * h6 + gy * h7 + h8         # (bt, T)
    r = pl.reciprocal(k, approx=True)
    r = r * (2.0 - k * r)

    out_ref[...] = (gx * ha + gy * hb + hc) * r


# ----------------------------------------------------------------------------
# Wrapper: JAX/Pallas equivalent of HomographyGridGen(out_h, out_w).forward(theta)
# Returns (b, out_h, out_w, 2), matching torch.cat((grid_Xp, grid_Yp), 3).
# ----------------------------------------------------------------------------
@functools.partial(jax.jit, static_argnames=("out_h", "out_w", "batch_tile"))
def homography_grid_gen(theta, out_h=16, out_w=16, batch_tile=None):
    theta = theta.astype(jnp.float32)
    b = theta.shape[0]
    H = theta if theta.shape[1] == 9 else homography_mat_from_4_pts(theta)

    hw = out_h * out_w
    two_hw = 2 * hw

    # ---- tiling choices ----------------------------------------------------
    two_hw_tile = min(_round_up(two_hw, 128), 32768)            # lane-dense tile
    bt = batch_tile if batch_tile is not None else min(b, 8)    # batches per step
    bp = _round_up(b, bt)                                       # padded batch
    two_hw_pad = _round_up(two_hw, two_hw_tile)
    # v7x has 2 TensorCores per chip: ensure >= 2 grid steps when possible so
    # a 'parallel' axis can be split across cores.
    if (bp // bt) * (two_hw_pad // two_hw_tile) < 2 and two_hw > 128:
        two_hw_tile = _round_up((two_hw + 1) // 2, 128)
        two_hw_pad = _round_up(two_hw, two_hw_tile)
    n_hw = two_hw_pad // two_hw_tile
    n_b = bp // bt

    # ---- interleaved flattened base grid (static constant of out_h/out_w) ---
    xs = jnp.linspace(-1.0, 1.0, out_w, dtype=jnp.float32)
    ys = jnp.linspace(-1.0, 1.0, out_h, dtype=jnp.float32)
    gx = jnp.broadcast_to(xs[None, :], (out_h, out_w)).reshape(hw)   # varies along W
    gy = jnp.broadcast_to(ys[:, None], (out_h, out_w)).reshape(hw)   # varies along H
    gx_i = jnp.repeat(gx, 2)                                         # lanes 2p, 2p+1
    gy_i = jnp.repeat(gy, 2)
    gxy = jnp.stack([gx_i, gy_i], axis=0)                            # (2, two_hw)
    if two_hw_pad > two_hw:
        # Edge padding keeps the padded-lane denominator finite even for
        # user-supplied 3x3 homographies with h8 ~ 0 (padding is sliced away).
        gxy = jnp.pad(gxy, ((0, 0), (0, two_hw_pad - two_hw)), mode="edge")

    # ---- pad batch with identity homographies (results sliced away) --------
    Hp = H
    if bp > b:
        eye = jnp.array([1., 0., 0., 0., 1., 0., 0., 0., 1.], jnp.float32)
        Hp = jnp.concatenate([H, jnp.broadcast_to(eye[None, :], (bp - b, 9))], axis=0)
    Hp = Hp.reshape(bp, 1, 9)

    out = pl.pallas_call(
        _homo_grid_kernel,
        out_shape=jax.ShapeDtypeStruct((bp, two_hw_pad), jnp.float32),
        # hw is the OUTER axis so the base-grid block stays resident across
        # the inner batch loop (no per-step re-DMA of gxy).
        grid=(n_hw, n_b),
        in_specs=[
            pl.BlockSpec((bt, 1, 9), lambda j, i: (i, 0, 0)),        # H coeffs (tiny)
            pl.BlockSpec((2, two_hw_tile), lambda j, i: (0, j)),     # base grid
        ],
        out_specs=pl.BlockSpec((bt, two_hw_tile), lambda j, i: (i, j)),
        compiler_params=pltpu.CompilerParams(
            dimension_semantics=("parallel", "parallel"),
            vmem_limit_bytes=32 * 1024 * 1024),
    )(Hp, gxy)

    # Interleaved layout => no transpose: single slice + reshape.
    return out[:b, :two_hw].reshape(b, out_h, out_w, 2)


# ----------------------------------------------------------------------------
# Pure-JAX reference (mirrors the PyTorch forward) for correctness checks.
# ----------------------------------------------------------------------------
def _reference_forward(theta, out_h, out_w):
    theta = theta.astype(jnp.float32)
    H = theta if theta.shape[1] == 9 else homography_mat_from_4_pts(theta)
    xs = jnp.linspace(-1.0, 1.0, out_w, dtype=jnp.float32)
    ys = jnp.linspace(-1.0, 1.0, out_h, dtype=jnp.float32)
    gx = jnp.broadcast_to(xs[None, :], (out_h, out_w))[None]
    gy = jnp.broadcast_to(ys[:, None], (out_h, out_w))[None]
    h = [H[:, i][:, None, None] for i in range(9)]
    k = gx * h[6] + gy * h[7] + h[8]
    xp = (gx * h[0] + gy * h[1] + h[2]) / k
    yp = (gx * h[3] + gy * h[4] + h[5]) / k
    return jnp.stack([xp, yp], axis=3)


if __name__ == "__main__":
    key = jax.random.PRNGKey(0)
    base = jnp.array([-1., -1., 1., 1., -1., 1., -1., 1.], jnp.float32)

    # --- main check: small default-style shapes (b=2, 16x16 grid) -----------
    b, out_h, out_w = 2, 16, 16
    noise = 0.1 * jax.random.normal(key, (b, 8), dtype=jnp.float32)
    theta = base[None, :] + noise                                  # (2, 8)
    out = jax.block_until_ready(homography_grid_gen(theta, out_h=out_h, out_w=out_w))
    ref = _reference_forward(theta, out_h, out_w)
    assert out.shape == (b, out_h, out_w, 2), out.shape
    assert jnp.allclose(out, ref, atol=1e-5, rtol=1e-5), "mismatch vs reference (16x16)"

    # --- direct 3x3 parameterization path (theta with 9 columns) ------------
    theta9 = homography_mat_from_4_pts(theta)                      # (2, 9)
    out9 = jax.block_until_ready(homography_grid_gen(theta9, out_h=out_h, out_w=out_w))
    assert jnp.allclose(out9, ref, atol=1e-5, rtol=1e-5), "mismatch vs reference (3x3 path)"

    # --- non-multiple-of-128 HW and odd batch (HW padding path) -------------
    b2, oh2, ow2 = 3, 20, 12
    noise2 = 0.1 * jax.random.normal(jax.random.PRNGKey(1), (b2, 8), dtype=jnp.float32)
    theta2 = base[None, :] + noise2
    out2 = jax.block_until_ready(homography_grid_gen(theta2, out_h=oh2, out_w=ow2))
    ref2 = _reference_forward(theta2, oh2, ow2)
    assert out2.shape == (b2, oh2, ow2, 2), out2.shape
    assert jnp.allclose(out2, ref2, atol=1e-5, rtol=1e-5), "mismatch vs reference (20x12)"

    # --- batch > 8 (batch tiling + identity-homography batch padding) -------
    b3 = 10
    noise3 = 0.1 * jax.random.normal(jax.random.PRNGKey(2), (b3, 8), dtype=jnp.float32)
    theta3 = base[None, :] + noise3
    out3 = jax.block_until_ready(homography_grid_gen(theta3, out_h=out_h, out_w=out_w))
    ref3 = _reference_forward(theta3, out_h, out_w)
    assert out3.shape == (b3, out_h, out_w, 2), out3.shape
    assert jnp.allclose(out3, ref3, atol=1e-5, rtol=1e-5), "mismatch vs reference (b=10)"

    print("KERNEL_OK")
</pallas_src>

<mosaic_0001>
module attributes {stable_mosaic.version = 11 : i64} {
  func.func @_homo_grid_kernel(%arg0: i32, %arg1: i32, %arg2: memref<2x1x9xf32, #tpu.memory_space<vmem>>, %arg3: memref<2x256xf32, #tpu.memory_space<vmem>>, %arg4: memref<2x256xf32, #tpu.memory_space<vmem>>) attributes {dimension_semantics = [#tpu.dimension_semantics<parallel>, #tpu.dimension_semantics<parallel>], iteration_bounds = array<i64: 2, 1>, scalar_prefetch = 0 : i64, scratch_operands = 0 : i64, tpu.core_type = #tpu.core_type<tc>, window_params = [{transform_indices = @transform_0, window_bounds = array<i64: 2, 1, 9>}, {transform_indices = @transform_1, window_bounds = array<i64: 2, 256>}, {transform_indices = @transform_2, window_bounds = array<i64: 2, 256>}]} {
    %c0 = arith.constant 0 : index
    %c0_0 = arith.constant 0 : index
    %c0_1 = arith.constant 0 : index
    %0 = vector.load %arg2[%c0, %c0_0, %c0_1] : memref<2x1x9xf32, #tpu.memory_space<vmem>>, vector<2x1x9xf32>
    %1 = vector.shape_cast %0 : vector<2x1x9xf32> to vector<2x9xf32>
    %c0_2 = arith.constant 0 : index
    %c0_3 = arith.constant 0 : index
    %2 = vector.load %arg3[%c0_2, %c0_3] : memref<2x256xf32, #tpu.memory_space<vmem>>, vector<1x256xf32>
    %c1 = arith.constant 1 : index
    %c0_4 = arith.constant 0 : index
    %3 = vector.load %arg3[%c1, %c0_4] : memref<2x256xf32, #tpu.memory_space<vmem>>, vector<1x256xf32>
    %4 = tpu.iota {dimensions = array<i32: 1>} : vector<1x256xi32>
    %c1_i32 = arith.constant 1 : i32
    %5 = vector.broadcast %c1_i32 : i32 to vector<1x256xi32>
    %6 = arith.andi %4, %5 : vector<1x256xi32>
    %c0_i32 = arith.constant 0 : i32
    %7 = vector.broadcast %c0_i32 : i32 to vector<1x256xi32>
    %8 = arith.cmpi eq, %6, %7 : vector<1x256xi32>
    %9 = vector.extract_strided_slice %1 {offsets = [0, 0], sizes = [2, 1], strides = [1, 1]} : vector<2x9xf32> to vector<2x1xf32>
    %10 = vector.extract_strided_slice %1 {offsets = [0, 1], sizes = [2, 1], strides = [1, 1]} : vector<2x9xf32> to vector<2x1xf32>
    %11 = vector.extract_strided_slice %1 {offsets = [0, 2], sizes = [2, 1], strides = [1, 1]} : vector<2x9xf32> to vector<2x1xf32>
    %12 = vector.extract_strided_slice %1 {offsets = [0, 3], sizes = [2, 1], strides = [1, 1]} : vector<2x9xf32> to vector<2x1xf32>
    %13 = vector.extract_strided_slice %1 {offsets = [0, 4], sizes = [2, 1], strides = [1, 1]} : vector<2x9xf32> to vector<2x1xf32>
    %14 = vector.extract_strided_slice %1 {offsets = [0, 5], sizes = [2, 1], strides = [1, 1]} : vector<2x9xf32> to vector<2x1xf32>
    %15 = vector.extract_strided_slice %1 {offsets = [0, 6], sizes = [2, 1], strides = [1, 1]} : vector<2x9xf32> to vector<2x1xf32>
    %16 = vector.extract_strided_slice %1 {offsets = [0, 7], sizes = [2, 1], strides = [1, 1]} : vector<2x9xf32> to vector<2x1xf32>
    %17 = vector.extract_strided_slice %1 {offsets = [0, 8], sizes = [2, 1], strides = [1, 1]} : vector<2x9xf32> to vector<2x1xf32>
    %18 = vector.shape_cast %8 : vector<1x256xi1> to vector<1x256xi1>
    %19 = vector.broadcast %18 : vector<1x256xi1> to vector<2x256xi1>
    %20 = vector.shape_cast %9 : vector<2x1xf32> to vector<2x1xf32>
    %21 = vector.broadcast %20 : vector<2x1xf32> to vector<2x256xf32>
    %22 = vector.shape_cast %12 : vector<2x1xf32> to vector<2x1xf32>
    %23 = vector.broadcast %22 : vector<2x1xf32> to vector<2x256xf32>
    %24 = arith.select %19, %21, %23 : vector<2x256xi1>, vector<2x256xf32>
    %25 = vector.shape_cast %8 : vector<1x256xi1> to vector<1x256xi1>
    %26 = vector.broadcast %25 : vector<1x256xi1> to vector<2x256xi1>
    %27 = vector.shape_cast %10 : vector<2x1xf32> to vector<2x1xf32>
    %28 = vector.broadcast %27 : vector<2x1xf32> to vector<2x256xf32>
    %29 = vector.shape_cast %13 : vector<2x1xf32> to vector<2x1xf32>
    %30 = vector.broadcast %29 : vector<2x1xf32> to vector<2x256xf32>
    %31 = arith.select %26, %28, %30 : vector<2x256xi1>, vector<2x256xf32>
    %32 = vector.shape_cast %8 : vector<1x256xi1> to vector<1x256xi1>
    %33 = vector.broadcast %32 : vector<1x256xi1> to vector<2x256xi1>
    %34 = vector.shape_cast %11 : vector<2x1xf32> to vector<2x1xf32>
    %35 = vector.broadcast %34 : vector<2x1xf32> to vector<2x256xf32>
    %36 = vector.shape_cast %14 : vector<2x1xf32> to vector<2x1xf32>
    %37 = vector.broadcast %36 : vector<2x1xf32> to vector<2x256xf32>
    %38 = arith.select %33, %35, %37 : vector<2x256xi1>, vector<2x256xf32>
    %39 = vector.broadcast %2 : vector<1x256xf32> to vector<2x256xf32>
    %40 = vector.broadcast %15 : vector<2x1xf32> to vector<2x256xf32>
    %41 = arith.mulf %39, %40 : vector<2x256xf32>
    %42 = vector.broadcast %3 : vector<1x256xf32> to vector<2x256xf32>
    %43 = vector.broadcast %16 : vector<2x1xf32> to vector<2x256xf32>
    %44 = arith.mulf %42, %43 : vector<2x256xf32>
    %45 = arith.addf %41, %44 : vector<2x256xf32>
    %46 = vector.broadcast %17 : vector<2x1xf32> to vector<2x256xf32>
    %47 = arith.addf %45, %46 : vector<2x256xf32>
    %48 = tpu.reciprocal %47 {approx = true} : vector<2x256xf32> -> vector<2x256xf32>
    %49 = arith.mulf %47, %48 : vector<2x256xf32>
    %cst = arith.constant 2.000000e+00 : f32
    %50 = vector.broadcast %cst : f32 to vector<2x256xf32>
    %51 = arith.subf %50, %49 : vector<2x256xf32>
    %52 = arith.mulf %48, %51 : vector<2x256xf32>
    %53 = vector.broadcast %2 : vector<1x256xf32> to vector<2x256xf32>
    %54 = arith.mulf %53, %24 : vector<2x256xf32>
    %55 = vector.broadcast %3 : vector<1x256xf32> to vector<2x256xf32>
    %56 = arith.mulf %55, %31 : vector<2x256xf32>
    %57 = arith.addf %54, %56 : vector<2x256xf32>
    %58 = arith.addf %57, %38 : vector<2x256xf32>
    %59 = arith.mulf %58, %52 : vector<2x256xf32>
    %c0_5 = arith.constant 0 : index
    %c0_6 = arith.constant 0 : index
    %60 = vector.load %arg4[%c0_5, %c0_6] : memref<2x256xf32, #tpu.memory_space<vmem>>, vector<2x256xf32>
    tpu.vector_store %arg4[%c0_5, %c0_6], %59 {strides = array<i32>} : memref<2x256xf32, #tpu.memory_space<vmem>>, vector<2x256xf32>,
    return
  }
  func.func @transform_0(%arg0: i32, %arg1: i32) -> (i32, i32, i32) {
    %c0_i32 = arith.constant 0 : i32
    %c0_i32_0 = arith.constant 0 : i32
    %c0_i32_1 = arith.constant 0 : i32
    return %arg1, %c0_i32, %c0_i32_0 : i32, i32, i32
  }
  func.func @transform_1(%arg0: i32, %arg1: i32) -> (i32, i32) {
    %c0_i32 = arith.constant 0 : i32
    %c0_i32_0 = arith.constant 0 : i32
    return %c0_i32, %arg0 : i32, i32
  }
  func.func @transform_2(%arg0: i32, %arg1: i32) -> (i32, i32) {
    %c0_i32 = arith.constant 0 : i32
    return %arg1, %arg0 : i32, i32
  }
}

</mosaic_0001>

<bundles_post_ra>
// kernel: custom-call.8
= control target key start
LH: loop header
LB: loop body
LE: loop exit
PB: predicated region body
PF: predicated region fallthrough
CT: control target
= control target key end

     0   :  { %5 = vsyncpa [#allocation4], 0  ;;  %s887_s0 = inlined_call_operand.vmem [shape: f32[2,8,8], index: 0, kind: input, shape index: {}]   ;;  %s888_s1 = inlined_call_operand.vmem [shape: f32[2,8,8], index: 1, kind: output, shape index: {0}]   ;;  %s889_s2 = inlined_call_operand.hbm [shape: s32[2,8], index: 2, kind: output, shape index: {1}]   ;;  %s890_s3 = inlined_call_operand.vmem [shape: s32[2,8], index: 3, kind: output, shape index: {2}]  }
   0x1   :  { %7 = vsyncpa [#allocation4 + $0x1], 0  ;;  %s713_s12 = smov 0   ;;  %s715_s13 = smov 0  }
   0x2   :  { %s717_s14 = smov 0   ;;  %s719_s15 = smov 0  }
   0x3 LB: > { %s734_s16 = sadd.s32 4294967295, %s685_s15   ;;  %s550_s17 = sadd.s32 4294967294, %s685_s15   ;;  %s685_s15 = sphi %s719_s15, %s902_s15   ;;  %s681_s14 = sphi %s717_s14, %s901_s14   ;;  %s677_s13 = sphi %s715_s13, %s900_s13   ;;  %s673_s12 = sphi %s713_s12, %s899_s12  }
   0x4   : > { %s738_s18 = sadd.s32 1, %s685_s15   ;;  %s17_s19 = sshrl.u32 %s685_s15, 3 }
   0x5   : > { %s18_s20 = sshrl.u32 %s738_s18, 3  ;;  %s22_s21 = sadd.s32 1, %s681_s14 }
   0x6   : > { %s19_s22 = ssub.s32 %s17_s19, %s18_s20  ;;  %p32_p0 = scmp.ne.s32.totalorder %s681_s14, %s677_s13 }
   0x7   : > { %p20_p1 = scmp.eq.s32.totalorder %s19_s22, 0  ;;  %p33_p2 = scmp.eq.s32.totalorder %s734_s16, 1 }
   0x8   : > { %p38_p3 = scmp.ne.s32.totalorder %s677_s13, %s673_s12  ;;  %p39_p4 = scmp.eq.s32.totalorder %s550_s17, 1 }
   0x9   : > { %s749_s23 = scalar_select %p20_p1, %s681_s14, %s22_s21  }
   0xa   : > { %p751_p5 = por %p33_p2, %p32_p0  ;;  %p755_p6 = por %p39_p4, %p38_p3 }
   0xb   : > { %p892_p7 = scmp.ge.s32.totalorder %s685_s15, 2 }
   0xc   : > { %s85_s26 = sand.u32 (!%p892_p7), 1, %s685_s15   ;;  %s554_s27 = sshll.u32 (!%p892_p7), %s685_s15, 3 }
   0xd   : > { %83 = sbr.rel (%p892_p7) target bundleno = 20 (0x14), region = 16  ;;  %s553_s28 = sshll.u32 (!%p892_p7), %s85_s26, 3 }
   0xe   : > { %s89_s4 = scalar_lea.vmem (!%p892_p7), %s887_s0, %s554_s27  ;;  %s87_s5 = scalar_lea.vmem (!%p892_p7), [#allocation0], %s553_s28 }
  0x12   : > { %v118_v0 = vld [vmem:[%s89_s4] sm:$0xff] }
  0x13   : > { %119 = vst [vmem:[%s87_s5] sm:$0xff] %v118_v0 }
  0x14 PF: > { %p555_p8 = scmp.ge.s32.totalorder %s685_s15, 1  ;;  %p124_p9 = scmp.lt.s32.totalorder %s685_s15, 3 }
  0x16   : > { %p125_p10 = pnand %p555_p8, %p124_p9 }
  0x18   : > { %128 = sbr.rel (%p125_p10) target bundleno = 438 (0x1b6), region = 54 }
  0x1d   : > { %s131_s6 = sand.u32 1, %s734_s16   ;;  %s146_s7 = sand.u32 1, %s677_s13   ;;  %v164_v1 = vlaneseq  ;;  %v691_v4 = vmov 0  }
  0x1e   : > { %s556_s8 = sshll.u32 %s131_s6, 3  ;;  %s773_s9 = sshll.u32 %s146_s7, 1 }
  0x1f   : > { %v776_v2 = vshrl.u32 %v164_v1, 7  ;;  %s133_s10 = scalar_lea.vmem [#allocation0], %s556_s8  ;;  %s778_s11 = scalar_lea.vmem [#allocation1], %s556_s8 }
  0x20   : > { %v157_v3 = vld [vmem:[%s133_s10] sm:$0xff]  ;;  %s159_s17 = sand.u32 7, %s734_s16   ;;  %s148_s20 = scalar_lea.vmem [#allocation3], %s773_s9 }
  0x21   : > { %158 = vst [vmem:[%s778_s11] sm:$0xff] %v157_v3  ;;  %168 = vst [vmem:[#allocation7] sm:$0xff] %v776_v2  ;;  %s783_s19 = scalar_lea.vmem [#allocation2], %s159_s17  ;;  %s788_s22 = scalar_lea.vmem [#allocation5], %s159_s17 }
  0x22   : > { %163 = vst [vmem:[%s783_s19] sm:$0x1] %v691_v4  ;;  %s790_s26 = smov 0  }
  0x23 LB: >> { %v797_v7 = vstv %s689_s26  ;;  %s225_s27 = ssub.s32 128, %s689_s26  ;;  %v231_v37 = vand.u32 127, %v164_v1  ;;  %s237_s28 = scalar_lea.vmem %s778_s11, %s689_s26 [#allocation1]  ;;  %s689_s26 = sphi %s790_s26, %s174_s26  }
  0x24   : >> { %vm183_vm0 = vcmp.ge.s32.totalorder %v776_v2, %v797_v7  ;;  %s243_s30 = scalar_lea.vmem [#allocation7], %s689_s26  ;;  %vm263_vm13 = vcmp.gt.s32.totalorder %v776_v2, %v797_v7  ;;  %s174_s26 = sadd.s32 1, %s689_s26  }
  0x25   : >> { %vm255_vm10 = vcmp.gt.s32.totalorder %v231_v37, %v797_v7  ;;  %vm232_vm11 = vcmp.eq.s32.totalorder %v231_v37, %v797_v7  ;;  %p171_p11 = scmp.ge.s32.totalorder %s174_s26, 8  }
  0x26   : >> { %vm267_vm15 = vmand %vm263_vm13, %vm232_vm11  ;;  %s891_s6 = sshrl.u32 (%p171_p11), %s734_s16, 3  ;;  %s564_s8 = sshll.u32 (%p171_p11), %s734_s16, 3 }
  0x27   : > { %s565_s10 = sshll.u32 (%p171_p11), %s891_s6, 5  ;;  %s692_s6 = smov (%p171_p11), [#allocation3]  }
  0x28   : >> { %v179_v5 = vld [vmem:[%s778_s11] sm:$0xff]  ;;  %v239_v40 = vld [vmem:[%s237_s28] ss:$0 sm:$0xff]  ;;  %s625_s21 = sshll.u32 (%p171_p11), %s692_s6, 4  ;;  %s626_s21 = int_to_ptr.vmem [resolvable:$false] %s625_s21 }
  0x29   : >> { %v180_v6 = vand.u32 2147483647, %v179_v5  ;;  %v234_v39 = vld [vmem:[%s783_s19] ss:$0 sm:$0xff] }
  0x2a   : >> { %v245_v41 = vld [vmem:[%s243_s30] ss:$0 sm:$0xff] }
  0x2b   : >> { %vm560_vm1 = vcmp.gt.f32.partialorder %v180_v6, -inf }
  0x2c   : >> { %vm187_vm2 = vmand %vm183_vm0, %vm560_vm1 }
  0x2d   : >> { %v188_v8 = vsel %vm187_vm2, %v776_v2, %v797_v7  ;;  %v189_v9 = vsel %vm187_vm2, %v180_v6, -inf }
  0x2e   : >> { %v190_v10 = vrot.slane %v189_v9, 1  ;;  %v191_v11 = vrot.slane %v188_v8, 1 }
  0x30   : >> { %vm192_vm3 = vcmp.ge.f32.partialorder %v190_v10, %v189_v9  ;;  %v195_v12 = vrot.slane %v190_v10, 1  ;;  %v196_v13 = vrot.slane %v191_v11, 1 }
  0x31   : >> { %v193_v14 = vsel %vm192_vm3, %v190_v10, %v189_v9  ;;  %v194_v15 = vsel %vm192_vm3, %v191_v11, %v188_v8 }
  0x32   : >> { %vm197_vm4 = vcmp.ge.f32.partialorder %v195_v12, %v193_v14  ;;  %v200_v16 = vrot.slane %v195_v12, 1  ;;  %v201_v17 = vrot.slane %v196_v13, 1 }
  0x33   : >> { %v198_v18 = vsel %vm197_vm4, %v195_v12, %v193_v14  ;;  %v199_v19 = vsel %vm197_vm4, %v196_v13, %v194_v15 }
  0x34   : >> { %vm202_vm5 = vcmp.ge.f32.partialorder %v200_v16, %v198_v18  ;;  %v205_v20 = vrot.slane %v200_v16, 1  ;;  %v206_v21 = vrot.slane %v201_v17, 1 }
  0x35   : >> { %v203_v22 = vsel %vm202_vm5, %v200_v16, %v198_v18  ;;  %v204_v23 = vsel %vm202_vm5, %v201_v17, %v199_v19 }
  0x36   : >> { %vm207_vm6 = vcmp.ge.f32.partialorder %v205_v20, %v203_v22  ;;  %v210_v24 = vrot.slane %v205_v20, 1  ;;  %v211_v25 = vrot.slane %v206_v21, 1 }
  0x37   : >> { %v208_v26 = vsel %vm207_vm6, %v205_v20, %v203_v22  ;;  %v209_v27 = vsel %vm207_vm6, %v206_v21, %v204_v23 }
  0x38   : >> { %vm212_vm7 = vcmp.ge.f32.partialorder %v210_v24, %v208_v26  ;;  %v215_v28 = vrot.slane %v210_v24, 1  ;;  %v216_v29 = vrot.slane %v211_v25, 1 }
  0x39   : >> { %v213_v30 = vsel %vm212_vm7, %v210_v24, %v208_v26  ;;  %v214_v31 = vsel %vm212_vm7, %v211_v25, %v209_v27 }
  0x3a   : >> { %vm217_vm8 = vcmp.ge.f32.partialorder %v215_v28, %v213_v30  ;;  %v220_v32 = vrot.slane %v215_v28, 1  ;;  %v221_v33 = vrot.slane %v216_v29, 1 }
  0x3b   : >> { %v218_v34 = vsel %vm217_vm8, %v215_v28, %v213_v30  ;;  %v219_v35 = vsel %vm217_vm8, %v216_v29, %v214_v31 }
  0x3c   : >> { %vm222_vm9 = vcmp.ge.f32.partialorder %v220_v32, %v218_v34 }
  0x3d   : >> { %v224_v36 = vsel %vm222_vm9, %v221_v33, %v219_v35 }
  0x3e   : >> { %226 = vrot.lane.b32.xlu0 %v224_v36, %s225_s27 }
  0xb0   : >> { %v227_v38 = vpop.permute.xlu0 %226 }
  0xb1   : >> { %569 = vpush %v227_v38 }
  0xe2   : >> { %s570_s29 = spop %569 }
  0xe3   : >> { %v233_v42 = vstv %s570_s29  ;;  %s238_s4 = scalar_lea.vmem %s778_s11, %s570_s29 [#allocation1]  ;;  %s244_s5 = scalar_lea.vmem [#allocation7], %s570_s29 }
  0xe4   : >> { %v240_v43 = vld [vmem:[%s238_s4] ss:$0 sm:$0xff]  ;;  %v235_v45 = vsel %vm232_vm11, %v233_v42, %v234_v39  ;;  %s395_s29 = scalar_lea.hbm (%p171_p11), %s889_s2, %s565_s10 }
  0xe5   : >> { %v246_v44 = vld [vmem:[%s244_s5] ss:$0 sm:$0xff]  ;;  %241 = vst [vmem:[%s238_s4] sm:$0x1] %v239_v40  ;;  %vm249_vm12 = vcmp.ne.f32.partialorder %v240_v43, 0.0  ;;  %236 = vst [vmem:[%s783_s19] sm:$0x1] %v235_v45  ;;  %v256_v52 = vsel %vm255_vm10, %v240_v43, 0.0  ;;  %s353_s19 = scalar_lea.vmem (%p171_p11), %s888_s1, %s564_s8 }
  0xe6   : >> { %247 = vst [vmem:[%s244_s5] sm:$0x1] %v245_v41  ;;  %242 = vst [vmem:[%s237_s28] sm:$0x1] %v240_v43  ;;  %s344_s4 = scalar_lea.sflag (%p171_p11), [#allocation4], %s146_s7  ;;  %s627_s8 = scalar_lea.vmem (%p171_p11), %s626_s21, 64 }
  0xe7   : >> { %248 = vst [vmem:[%s243_s30] sm:$0x1] %v246_v44  ;;  %vm250_vm14 = vmand %vm232_vm11, %vm249_vm12  ;;  %s397_s30 = sshll.u32 (%p171_p11), %s148_s20, 4  ;;  %s398_s30 = int_to_ptr.vmem [resolvable:$true] %s397_s30 }
  0xe8   : >> { %v251_v46 = vsel %vm250_vm14, %v240_v43, 1.0  ;;  %s621_s5 = scalar_lea.vmem (%p171_p11), %s398_s30, 32  ;;  %p628_p1 = scmp.lt.s32.totalorder (%p171_p11), %s398_s30, %s626_s21 }
  0xe9   : >> { %v264_v47 = vsel %vm263_vm13, %v251_v46, 1.0  ;;  %p622_p12 = scmp.ne.s32.totalorder (%p171_p11), %s398_s30, %s621_s5  ;;  %p629_p2 = scmp.lt.s32.totalorder (%p171_p11), %s627_s8, %s621_s5 }
  0xea   : >> { %619 = vrcp.f32 %v264_v47 }
  0xeb   : > { %p623_p13 = pnand (%p171_p11), %p622_p12, %p751_p5  ;;  %p630_p3 = por (%p171_p11), %p629_p2, %p628_p1 }
  0xec   : > { %v327_v57 = vld [vmem:[#allocation2] sm:$0x3] (%p171_p11) }
  0xed   : >> { %v260_v49 = vld [vmem:[%s778_s11] sm:$0xff]  ;;  %330 = vst [vmem:[%s148_s20] sm:$0x3] (%p171_p11), %v327_v57  ;;  %p624_p0 = pneg (%p171_p11), %p623_p13 }
  0xee   : > { %v274_v56 = vld [vmem:[#allocation7] sm:$0xff] (%p171_p11) }
  0xef   : > { %p631_p4 = pnand (%p171_p11), %p630_p3, %p624_p0 }
  0xf7   : >> { %v620_v48 = vpop.eup %619 }
  0xf8   : >> { %v266_v50 = vmul.f32 %v620_v48, %v260_v49 }
  0xfa   : >> { %v268_v51 = vsel %vm267_vm15, %v266_v50, 0.0 }
  0xfb   : >> { %269 = vadd.xlane.f32.xlu0 %v268_v51 }
 0x128   : > { %290 = vxpose.xlu0.b32.start.end [1/1] (short) (narrow) (%p171_p11), %v274_v56, 8 }
 0x184   : >> { %v270_v53 = vpop.xlane.xlu0 %269 }
 0x185   : >> { %v271_v54 = vmul.f32 %v270_v53, %v256_v52  ;;  %173 = sbr.rel (!%p171_p11) target bundleno = 35 (0x23), region = 210 }
 0x187   : >> { %v272_v55 = vsub.f32 %v266_v50, %v271_v54 }
 0x189   : >> { %273 = vst [vmem:[%s778_s11] sm:$0xff] %v272_v55 }
 0x190   : > { %v382_v58 = vld [vmem:[%s778_s11] sm:$0xff] }
 0x191   : > { %383 = vst [vmem:[%s353_s19] sm:$0xff] %v382_v58 }
 0x192   : > { %634 = shalt.err (!%p631_p4)
}
 0x193   : > { %s635_s11 = scalar_lea.hbm %s395_s29, 32  ;;  %s639_s10 = scalar_lea.hbm %s889_s2, 32 }
 0x194   : > { %p636_p8 = scmp.ne.s32.totalorder %s395_s29, %s635_s11  ;;  %p640_p11 = scmp.lt.s32.totalorder %s395_s29, %s889_s2 }
 0x195   : > { %p641_p12 = scmp.lt.s32.totalorder %s639_s10, %s635_s11 }
 0x196   : > { %p637_p9 = pnand %p636_p8, %p751_p5 }
 0x197   : > { %p642_p13 = por %p641_p12, %p640_p11 }
 0x198   : > { %p638_p10 = pneg %p637_p9 }
 0x19a   : > { %p643_p7 = pnand %p642_p13, %p638_p10 }
 0x19c   : > { %646 = shalt.err (!%p643_p7)
}
 0x19d   : > { %571 = dma.vmem_to_hbm [thread:$0]  (%p751_p5), %s398_s30, 32, %s395_s29, %s344_s4  }
 0x19e   : > { %s895_s21 = scalar_lea.vmem [#allocation6], %s773_s9  ;;  %s896_s6 = sshrl.u32 (%p751_p5), %s734_s16, 3 }
 0x19f   : > { %s566_s19 = sshll.u32 (%p751_p5), %s896_s6, 1  ;;  %s897_s27 = scalar_lea.vmem (%p751_p5), [#allocation6], %s773_s9 }
 0x1a0   : > { %s406_s8 = scalar_lea.vmem (%p751_p5), %s890_s3, %s566_s19 }
 0x1a4   : > { %v306_v59 = vpop.trf.xlu0 }
 0x1a5   : > { %322 = vst [vmem:[%s788_s22] sm:$0x1] %v306_v59 }
 0x1a9   : > { %403 = sbr.rel (!%p751_p5) target bundleno = 438 (0x1b6), region = 104 }
 0x1ac   : > { %v335_v60 = vld [vmem:[#allocation5] sm:$0x3] }
 0x1ad   : > { %338 = vst [vmem:[%s895_s21] sm:$0x3] %v335_v60 }
 0x1b4   : > { %v423_v61 = vld [vmem:[%s897_s27] sm:$0x3] }
 0x1b5   : > { %424 = vst [vmem:[%s406_s8] sm:$0x3] %v423_v61 }
 0x1b6 PF: > { %s452_s22 = sand.u32 1, %s673_s12   ;;  %p898_p7 = scmp.ge.s32.totalorder %s685_s15, 2 }
 0x1b7   : > { %s453_s16 = scalar_lea.sflag [#allocation4], %s452_s22 }
 0x1b8   : > { %p574_p5 = pnand %p898_p7, %p755_p6 }
 0x1ba   : > { %p575_p0 = pneg %p574_p5 }
 0x1bc   : > { %668 = dma.done.wait (%p575_p0), %s453_s16, 32  }
 0x1bd   : > { %670 = vsyncadd (%p575_p0), %s453_s16, 4294967264  ;;  %p10_p1 = scmp.ge.s32.totalorder %s738_s18, 4   ;;  %s899_s12 = smov %s677_s13 }
 0x1be   : > { %s900_s13 = smov %s681_s14  ;;  %s901_s14 = smov %s749_s23 }
 0x1bf   : > { %s902_s15 = smov %s738_s18  ;;  %12 = sbr.rel (!%p10_p1) target bundleno = 3 (0x3), region = 221 }
 0x1c4   :  { %465 = vsyncpa [#allocation4], 1 }
 0x1c5   :  { %467 = vsyncpa [#allocation4 + $0x1], 1 }

// kernel: custom-call.10
= control target key start
LH: loop header
LB: loop body
LE: loop exit
PB: predicated region body
PF: predicated region fallthrough
CT: control target
= control target key end

     0   :  { %s387_s6 = smov 0   ;;  %s389_s7 = smov 0   ;;  %s445_s0 = inlined_call_operand.vmem [shape: f32[2,1,8,8], index: 0, kind: input, shape index: {}]   ;;  %s446_s1 = inlined_call_operand.vmem [shape: f32[2,1,8,8], index: 1, kind: output, shape index: {}]  }
   0x1   :  { %s391_s8 = smov 0  }
   0x2 LB: > { %s313_s9 = sadd.s32 4294967295, %s374_s8   ;;  %s33_s10 = sadd.s32 1, %s370_s7  ;;  %s374_s8 = sphi %s391_s8, %s7_s8   ;;  %s370_s7 = sphi %s389_s7, %s448_s7   ;;  %s366_s6 = sphi %s387_s6, %s447_s6  }
   0x3   : > { %p35_p0 = scmp.ge.s32.totalorder %s33_s10, 2  ;;  %p315_p1 = scmp.ge.s32.totalorder %s374_s8, 2 }
   0x4   : > { %s49_s11 = sand.u32 (!%p315_p1), 1, %s374_s8   ;;  %s317_s12 = sshll.u32 (!%p315_p1), %s370_s7, 3 }
   0x5   : > { %s450_s10 = smov (%p35_p0, %s33_s10), 0  ;;  %47 = sbr.rel (%p315_p1) target bundleno = 12 (0xc), region = 16 }
   0x6   : > { %s316_s13 = sshll.u32 (!%p315_p1), %s49_s11, 3  ;;  %s56_s16 = scalar_lea.vmem (!%p315_p1), %s445_s0, %s317_s12 }
   0x7   : > { %s51_s17 = scalar_lea.vmem (!%p315_p1), [#allocation0], %s316_s13 }
   0xa   : > { %v85_v0 = vld [vmem:[%s56_s16] sm:$0xff] }
   0xb   : > { %86 = vst [vmem:[%s51_s17] sm:$0xff] %v85_v0 }
   0xc PF: > { %p318_p2 = scmp.ge.s32.totalorder %s374_s8, 1  ;;  %p91_p3 = scmp.lt.s32.totalorder %s374_s8, 3 }
   0xe   : > { %p92_p4 = pnand %p318_p2, %p91_p3 }
  0x10   : > { %95 = sbr.rel (%p92_p4) target bundleno = 1182 (0x49e), region = 54 }
  0x15   : > { %s98_s18 = sand.u32 1, %s313_s9   ;;  %v109_v1 = vlaneseq  ;;  %v376_v10 = vmov -1.0   ;;  %s322_s21 = sshll.u32 %s366_s6, 3 }
  0x16   : > { %s319_s19 = sshll.u32 %s98_s18, 3  ;;  %s220_s24 = scalar_lea.vmem %s446_s1, %s322_s21 }
  0x17   : > { %v414_v2 = vand.u32 127, %v109_v1  ;;  %v113_v3 = vshrl.u32 %v109_v1, 7  ;;  %s100_s20 = scalar_lea.vmem [#allocation0], %s319_s19 }
  0x18   : > { %v116_v4 = vld [vmem:[%s100_s20] sm:$0xff] }
  0x19   : > { %vm111_vm0 = vcmp.lt.s32.totalorder %v414_v2, 8  ;;  %vm115_vm1 = vcmp.eq.s32.totalorder %v113_v3, %v414_v2  ;;  %vm120_vm2 = vcmp.ge.s32.totalorder %v113_v3, %v414_v2  ;;  %vm134_vm4 = vcmp.eq.s32.totalorder %v414_v2, 0 }
  0x1a   : > { %v117_v5 = vsel %vm115_vm1, %v116_v4, 0.0  ;;  %vm121_vm3 = vmand %vm120_vm2, %vm111_vm0  ;;  %vm131_vm5 = vcmp.eq.s32.totalorder %v414_v2, %v113_v3  ;;  %v135_v11 = vsel %vm134_vm4, 1.0, %v376_v10  ;;  %vm142_vm6 = vcmp.eq.s32.totalorder %v414_v2, 1 }
  0x1b   : > { %v122_v6 = vsel %vm121_vm3, %v116_v4, 0.0  ;;  %118 = vadd.xlane.f32.xlu0 %v117_v5  ;;  %v136_v12 = vsel %vm131_vm5, %v135_v11, 0.0  ;;  %vm152_vm7 = vcmp.eq.s32.totalorder %v414_v2, 2  ;;  %vm162_vm8 = vcmp.eq.s32.totalorder %v414_v2, 3 }
  0x1c   : > { %vm172_vm9 = vcmp.eq.s32.totalorder %v414_v2, 4  ;;  %vm182_vm10 = vcmp.eq.s32.totalorder %v414_v2, 5  ;;  %vm192_vm11 = vcmp.eq.s32.totalorder %v414_v2, 6  ;;  %vm202_vm12 = vcmp.eq.s32.totalorder %v414_v2, 7 }
  0xa4   : > { %v419_v7 = vpop.xlane.xlu0 %118 }
  0xa5   : > { %350 = vrcp.f32 %v419_v7  ;;  %vm209_vm13 = vweird.f32 %v419_v7 }
  0xb2   : > { %v351_v8 = vpop.eup %350 }
  0xb3   : > { %v124_v9 = vmul.f32 %v351_v8, %v122_v6 }
  0xb5   : > { %125 = vst [vmem:[#allocation2] sm:$0xff] %v124_v9 }
  0xbc   : > { %v138_v13 = vld [vmem:[#allocation2 + $0x1] ss:$0 sm:$0xff]  ;;  %v148_v16 = vld [vmem:[#allocation2 + $0x2] ss:$0 sm:$0xff]  ;;  %v158_v21 = vld [vmem:[#allocation2 + $0x3] ss:$0 sm:$0xff] }
  0xbd   : > { %v139_v14 = vxor.u32 2147483648, %v138_v13  ;;  %v149_v18 = vxor.u32 2147483648, %v148_v16  ;;  %v159_v23 = vxor.u32 2147483648, %v158_v21  ;;  %v168_v26 = vld [vmem:[#allocation2 + $0x4] ss:$0 sm:$0xff] }
  0xbe   : > { %v169_v28 = vxor.u32 2147483648, %v168_v26  ;;  %v178_v31 = vld [vmem:[#allocation2 + $0x5] ss:$0 sm:$0xff]  ;;  %v188_v36 = vld [vmem:[#allocation2 + $0x6] ss:$0 sm:$0xff] }
  0xbf   : > { %v143_v15 = vmul.f32 %v139_v14, %v136_v12  ;;  %v179_v33 = vxor.u32 2147483648, %v178_v31  ;;  %v189_v38 = vxor.u32 2147483648, %v188_v36  ;;  %v198_v41 = vld [vmem:[#allocation2 + $0x7] ss:$0 sm:$0xff] }
  0xc0   : > { %v199_v43 = vxor.u32 2147483648, %v198_v41 }
  0xc1   : > { %144 = vadd.xlane.f32.xlu0 %v143_v15 }
 0x14a   : > { %v145_v17 = vpop.xlane.xlu0 %144 }
 0x14b   : > { %v146_v19 = vsel %vm142_vm6, %v145_v17, %v136_v12 }
 0x14c   : > { %v153_v20 = vmul.f32 %v149_v18, %v146_v19 }
 0x14e   : > { %154 = vadd.xlane.f32.xlu1 %v153_v20 }
 0x1d7   : > { %v155_v22 = vpop.xlane.xlu1 %154 }
 0x1d8   : > { %v156_v24 = vsel %vm152_vm7, %v155_v22, %v146_v19 }
 0x1d9   : > { %v163_v25 = vmul.f32 %v159_v23, %v156_v24 }
 0x1db   : > { %164 = vadd.xlane.f32.xlu1 %v163_v25 }
 0x264   : > { %v165_v27 = vpop.xlane.xlu1 %164 }
 0x265   : > { %v166_v29 = vsel %vm162_vm8, %v165_v27, %v156_v24 }
 0x266   : > { %v173_v30 = vmul.f32 %v169_v28, %v166_v29 }
 0x268   : > { %174 = vadd.xlane.f32.xlu0 %v173_v30 }
 0x2f1   : > { %v175_v32 = vpop.xlane.xlu0 %174 }
 0x2f2   : > { %v176_v34 = vsel %vm172_vm9, %v175_v32, %v166_v29 }
 0x2f3   : > { %v183_v35 = vmul.f32 %v179_v33, %v176_v34 }
 0x2f5   : > { %184 = vadd.xlane.f32.xlu1 %v183_v35 }
 0x37e   : > { %v185_v37 = vpop.xlane.xlu1 %184 }
 0x37f   : > { %v186_v39 = vsel %vm182_vm10, %v185_v37, %v176_v34 }
 0x380   : > { %v193_v40 = vmul.f32 %v189_v38, %v186_v39 }
 0x382   : > { %194 = vadd.xlane.f32.xlu0 %v193_v40 }
 0x40b   : > { %v195_v42 = vpop.xlane.xlu0 %194 }
 0x40c   : > { %v196_v44 = vsel %vm192_vm11, %v195_v42, %v186_v39 }
 0x40d   : > { %v203_v45 = vmul.f32 %v199_v43, %v196_v44 }
 0x40f   : > { %204 = vadd.xlane.f32.xlu1 %v203_v45 }
 0x498   : > { %v205_v46 = vpop.xlane.xlu1 %204 }
 0x499   : > { %v206_v47 = vsel %vm202_vm12, %v205_v46, %v196_v44 }
 0x49a   : > { %v208_v48 = vmul.f32 %v351_v8, %v206_v47 }
 0x49c   : > { %v210_v49 = vsel %vm209_vm13, %v206_v47, %v208_v48 }
 0x49d   : > { %250 = vst [vmem:[%s220_s24] sm:$0xff] %v210_v49 }
 0x49e PF: > { %s7_s8 = sadd.s32 1, %s374_s8   ;;  %s447_s6 = smov %s370_s7 }
 0x49f   : > { %p4_p5 = scmp.ge.s32.totalorder %s7_s8, 4   ;;  %s448_s7 = smov %s450_s10 }
 0x4a1   :  { %6 = sbr.rel (!%p4_p5) target bundleno = 2 (0x2), region = 125 }

// kernel: custom-call.9
= control target key start
LH: loop header
LB: loop body
LE: loop exit
PB: predicated region body
PF: predicated region fallthrough
CT: control target
= control target key end

     0   :  { %s386_s6 = smov 0   ;;  %s388_s7 = smov 0   ;;  %s444_s0 = inlined_call_operand.vmem [shape: f32[2,1,8,8], index: 0, kind: input, shape index: {}]   ;;  %s445_s1 = inlined_call_operand.vmem [shape: f32[2,1,8,8], index: 1, kind: output, shape index: {}]  }
   0x1   :  { %s390_s8 = smov 0  }
   0x2 LB: > { %s312_s9 = sadd.s32 4294967295, %s373_s8   ;;  %s33_s10 = sadd.s32 1, %s369_s7  ;;  %s373_s8 = sphi %s390_s8, %s7_s8   ;;  %s369_s7 = sphi %s388_s7, %s447_s7   ;;  %s365_s6 = sphi %s386_s6, %s446_s6  }
   0x3   : > { %p35_p0 = scmp.ge.s32.totalorder %s33_s10, 2  ;;  %p314_p1 = scmp.ge.s32.totalorder %s373_s8, 2 }
   0x4   : > { %s49_s11 = sand.u32 (!%p314_p1), 1, %s373_s8   ;;  %s316_s12 = sshll.u32 (!%p314_p1), %s369_s7, 3 }
   0x5   : > { %s449_s10 = smov (%p35_p0, %s33_s10), 0  ;;  %47 = sbr.rel (%p314_p1) target bundleno = 12 (0xc), region = 16 }
   0x6   : > { %s315_s13 = sshll.u32 (!%p314_p1), %s49_s11, 3  ;;  %s56_s16 = scalar_lea.vmem (!%p314_p1), %s444_s0, %s316_s12 }
   0x7   : > { %s51_s17 = scalar_lea.vmem (!%p314_p1), [#allocation0], %s315_s13 }
   0xa   : > { %v85_v0 = vld [vmem:[%s56_s16] sm:$0xff] }
   0xb   : > { %86 = vst [vmem:[%s51_s17] sm:$0xff] %v85_v0 }
   0xc PF: > { %p317_p2 = scmp.ge.s32.totalorder %s373_s8, 1  ;;  %p91_p3 = scmp.lt.s32.totalorder %s373_s8, 3 }
   0xe   : > { %p92_p4 = pnand %p317_p2, %p91_p3 }
  0x10   : > { %95 = sbr.rel (%p92_p4) target bundleno = 1182 (0x49e), region = 54 }
  0x15   : > { %s98_s18 = sand.u32 1, %s312_s9   ;;  %v109_v1 = vlaneseq  ;;  %v375_v10 = vmov -1.0   ;;  %s321_s21 = sshll.u32 %s365_s6, 3 }
  0x16   : > { %s318_s19 = sshll.u32 %s98_s18, 3  ;;  %s219_s24 = scalar_lea.vmem %s445_s1, %s321_s21 }
  0x17   : > { %v413_v2 = vand.u32 127, %v109_v1  ;;  %v113_v3 = vshrl.u32 %v109_v1, 7  ;;  %s100_s20 = scalar_lea.vmem [#allocation0], %s318_s19 }
  0x18   : > { %v116_v4 = vld [vmem:[%s100_s20] sm:$0xff] }
  0x19   : > { %vm111_vm0 = vcmp.lt.s32.totalorder %v413_v2, 8  ;;  %vm115_vm1 = vcmp.eq.s32.totalorder %v113_v3, %v413_v2  ;;  %vm120_vm2 = vcmp.le.s32.totalorder %v113_v3, %v413_v2  ;;  %vm134_vm4 = vcmp.eq.s32.totalorder %v413_v2, 7 }
  0x1a   : > { %v117_v5 = vsel %vm115_vm1, %v116_v4, 0.0  ;;  %vm121_vm3 = vmand %vm120_vm2, %vm111_vm0  ;;  %vm131_vm5 = vcmp.eq.s32.totalorder %v413_v2, %v113_v3  ;;  %v135_v11 = vsel %vm134_vm4, 1.0, %v375_v10  ;;  %vm142_vm6 = vcmp.eq.s32.totalorder %v413_v2, 6 }
  0x1b   : > { %v122_v6 = vsel %vm121_vm3, %v116_v4, 0.0  ;;  %118 = vadd.xlane.f32.xlu0 %v117_v5  ;;  %v136_v12 = vsel %vm131_vm5, %v135_v11, 0.0  ;;  %vm152_vm7 = vcmp.eq.s32.totalorder %v413_v2, 5  ;;  %vm162_vm8 = vcmp.eq.s32.totalorder %v413_v2, 4 }
  0x1c   : > { %vm172_vm9 = vcmp.eq.s32.totalorder %v413_v2, 3  ;;  %vm182_vm10 = vcmp.eq.s32.totalorder %v413_v2, 2  ;;  %vm192_vm11 = vcmp.eq.s32.totalorder %v413_v2, 1  ;;  %vm201_vm12 = vcmp.eq.s32.totalorder %v413_v2, 0 }
  0xa4   : > { %v418_v7 = vpop.xlane.xlu0 %118 }
  0xa5   : > { %349 = vrcp.f32 %v418_v7  ;;  %vm208_vm13 = vweird.f32 %v418_v7 }
  0xb2   : > { %v350_v8 = vpop.eup %349 }
  0xb3   : > { %v124_v9 = vmul.f32 %v350_v8, %v122_v6 }
  0xb5   : > { %125 = vst [vmem:[#allocation2] sm:$0xff] %v124_v9 }
  0xbc   : > { %v138_v13 = vld [vmem:[#allocation2 + $0x6] ss:$0 sm:$0xff]  ;;  %v148_v16 = vld [vmem:[#allocation2 + $0x5] ss:$0 sm:$0xff]  ;;  %v158_v21 = vld [vmem:[#allocation2 + $0x4] ss:$0 sm:$0xff] }
  0xbd   : > { %v139_v14 = vxor.u32 2147483648, %v138_v13  ;;  %v149_v18 = vxor.u32 2147483648, %v148_v16  ;;  %v159_v23 = vxor.u32 2147483648, %v158_v21  ;;  %v168_v26 = vld [vmem:[#allocation2 + $0x3] ss:$0 sm:$0xff] }
  0xbe   : > { %v169_v28 = vxor.u32 2147483648, %v168_v26  ;;  %v178_v31 = vld [vmem:[#allocation2 + $0x2] ss:$0 sm:$0xff]  ;;  %v188_v36 = vld [vmem:[#allocation2 + $0x1] ss:$0 sm:$0xff] }
  0xbf   : > { %v143_v15 = vmul.f32 %v139_v14, %v136_v12  ;;  %v179_v33 = vxor.u32 2147483648, %v178_v31  ;;  %v189_v38 = vxor.u32 2147483648, %v188_v36  ;;  %v197_v41 = vld [vmem:[#allocation2] ss:$0 sm:$0xff] }
  0xc0   : > { %v198_v43 = vxor.u32 2147483648, %v197_v41 }
  0xc1   : > { %144 = vadd.xlane.f32.xlu0 %v143_v15 }
 0x14a   : > { %v145_v17 = vpop.xlane.xlu0 %144 }
 0x14b   : > { %v146_v19 = vsel %vm142_vm6, %v145_v17, %v136_v12 }
 0x14c   : > { %v153_v20 = vmul.f32 %v149_v18, %v146_v19 }
 0x14e   : > { %154 = vadd.xlane.f32.xlu1 %v153_v20 }
 0x1d7   : > { %v155_v22 = vpop.xlane.xlu1 %154 }
 0x1d8   : > { %v156_v24 = vsel %vm152_vm7, %v155_v22, %v146_v19 }
 0x1d9   : > { %v163_v25 = vmul.f32 %v159_v23, %v156_v24 }
 0x1db   : > { %164 = vadd.xlane.f32.xlu1 %v163_v25 }
 0x264   : > { %v165_v27 = vpop.xlane.xlu1 %164 }
 0x265   : > { %v166_v29 = vsel %vm162_vm8, %v165_v27, %v156_v24 }
 0x266   : > { %v173_v30 = vmul.f32 %v169_v28, %v166_v29 }
 0x268   : > { %174 = vadd.xlane.f32.xlu0 %v173_v30 }
 0x2f1   : > { %v175_v32 = vpop.xlane.xlu0 %174 }
 0x2f2   : > { %v176_v34 = vsel %vm172_vm9, %v175_v32, %v166_v29 }
 0x2f3   : > { %v183_v35 = vmul.f32 %v179_v33, %v176_v34 }
 0x2f5   : > { %184 = vadd.xlane.f32.xlu1 %v183_v35 }
 0x37e   : > { %v185_v37 = vpop.xlane.xlu1 %184 }
 0x37f   : > { %v186_v39 = vsel %vm182_vm10, %v185_v37, %v176_v34 }
 0x380   : > { %v193_v40 = vmul.f32 %v189_v38, %v186_v39 }
 0x382   : > { %194 = vadd.xlane.f32.xlu0 %v193_v40 }
 0x40b   : > { %v195_v42 = vpop.xlane.xlu0 %194 }
 0x40c   : > { %v196_v44 = vsel %vm192_vm11, %v195_v42, %v186_v39 }
 0x40d   : > { %v202_v45 = vmul.f32 %v198_v43, %v196_v44 }
 0x40f   : > { %203 = vadd.xlane.f32.xlu1 %v202_v45 }
 0x498   : > { %v204_v46 = vpop.xlane.xlu1 %203 }
 0x499   : > { %v205_v47 = vsel %vm201_vm12, %v204_v46, %v196_v44 }
 0x49a   : > { %v207_v48 = vmul.f32 %v350_v8, %v205_v47 }
 0x49c   : > { %v209_v49 = vsel %vm208_vm13, %v205_v47, %v207_v48 }
 0x49d   : > { %249 = vst [vmem:[%s219_s24] sm:$0xff] %v209_v49 }
 0x49e PF: > { %s7_s8 = sadd.s32 1, %s373_s8   ;;  %s446_s6 = smov %s369_s7 }
 0x49f   : > { %p4_p5 = scmp.ge.s32.totalorder %s7_s8, 4   ;;  %s447_s7 = smov %s449_s10 }
 0x4a1   :  { %6 = sbr.rel (!%p4_p5) target bundleno = 2 (0x2), region = 124 }

// kernel: homography_grid_gen.1
= control target key start
LH: loop header
LB: loop body
LE: loop exit
PB: predicated region body
PF: predicated region fallthrough
CT: control target
= control target key end

     0   :  { %s868_s9 = smov 0   ;;  %s870_s10 = smov 0   ;;  %s1006_s0 = inlined_call_operand.vmem [shape: f32[2,1,9], index: 0, kind: input, shape index: {}]   ;;  %s1007_s1 = inlined_call_operand.vmem [shape: f32[2,512], index: 1, kind: input, shape index: {}]   ;;  %s1008_s2 = inlined_call_operand.vmem [shape: f32[2,512], index: 2, kind: output, shape index: {}]  }
   0x1   :  { %s872_s11 = smov 0  }
   0x2 LB: > { %s24_s12 = sadd.s32 1, %s837_s10  ;;  %p757_p0 = scmp.ge.s32.totalorder %s841_s11, 1  ;;  %s841_s11 = sphi %s872_s11, %s12_s11   ;;  %s837_s10 = sphi %s870_s10, %s1014_s10   ;;  %s833_s9 = sphi %s868_s9, %s1013_s9  }
   0x3   : > { %p26_p1 = scmp.ge.s32.totalorder %s24_s12, 2  ;;  %p137_p2 = scmp.lt.s32.totalorder %s841_s11, 3 }
   0x5   : > { %s1016_s12 = smov (%p26_p1, %s24_s12), 0  ;;  %p138_p3 = pnand %p757_p0, %p137_p2 }
   0x6   : > { %s758_s17 = sshll.u32 (!%p138_p3), %s833_s9, 1 }
   0x7   : > { %141 = sbr.rel (%p138_p3) target bundleno = 203 (0xcb), region = 28  ;;  %p173_p4 = scmp.lt.s32.totalorder (!%p138_p3), %s758_s17, 3 }
   0xc   : > { %v188_v0 = vld [vmem:[%s1006_s0] sm:$0x1]  ;;  %v843_v1 = vmov 7   ;;  %v844_v2 = vmov 6   ;;  %v189_v3 = vld [vmem:[%s1006_s0 + $0x1] sm:$0x1]  ;;  %v193_v11 = vlaneseq }
   0xd   : > { %801 = vset.pattern.permute.xlu1 %v843_v1  ;;  %800 = vset.pattern.permute.xlu0 %v844_v2  ;;  %v845_v4 = vmov 8   ;;  %v846_v5 = vmov 0   ;;  %v847_v6 = vmov 3   ;;  %v848_v7 = vmov 1   ;;  %s1018_s17 = smov (!%p173_p4, %s758_s17), 3 }
   0xe   : > { %538 = vperm.xlu1 %801, %v188_v0   ;;  %482 = vperm.xlu0 %800, %v188_v0   ;;  %v849_v8 = vmov 4   ;;  %v850_v9 = vmov 5   ;;  %v851_v10 = vmov 2   ;;  %v210_v12 = vshrl.u32 %v193_v11, 7  ;;  %s759_s18 = sshll.u32 %s1018_s17, 1 }
   0xf   : > { %v852_v13 = vmov 1966171168   ;;  %s176_s21 = scalar_lea.vmem %s1007_s1, %s759_s18  ;;  %s186_s24 = scalar_lea.vmem %s1008_s2, %s759_s18 }
  0x10   : > { %v242_v14 = vunpack.c.l.s4 %v852_v13  ;;  %v896_v17 = vsub.s32 0, %v210_v12  ;;  %v477_v34 = vsub.s32 1, %v210_v12  ;;  %v762_v35 = vld [vmem:[%s176_s21 + $0x1] ss:$2 sm:$0x3] }
  0x11   : > { %v190_v38 = vld [vmem:[%s176_s21] ss:$2 sm:$0x3] }
  0x12   : > { %546 = vperm.xlu1 %801, %v189_v3   ;;  %490 = vperm.xlu0 %800, %v189_v3   ;;  %v243_v18 = vunpack.c.0.s8 %v242_v14  ;;  %v917_v41 = vrot.slane %v762_v35, %v896_v17  ;;  %v919_v42 = vrot.slane %v762_v35, %v477_v34  ;;  %v923_v44 = vrot.slane %v190_v38, %v896_v17 }
  0x13   : > { %v927_v47 = vrot.slane %v190_v38, %v477_v34 }
  0x14   : > { %v904_v25 = vsub.s32 %v243_v18, %v210_v12  ;;  %v194_v18 = vand.u32 127, %v193_v11 }
  0x16   : > { %803 = vset.pattern.permute.xlu1 %v845_v4  ;;  %802 = vset.pattern.permute.xlu0 %v845_v4 }
  0x17   : > { %593 = vperm.xlu1 %803, %v189_v3   ;;  %585 = vperm.xlu0 %802, %v188_v0  }
  0x1b   : > { %804 = vset.pattern.permute.xlu1 %v846_v5  ;;  %805 = vset.pattern.permute.xlu0 %v846_v5 }
  0x1c   : > { %206 = vperm.xlu1 %804, %v188_v0   ;;  %215 = vperm.xlu0 %805, %v189_v3  }
  0x20   : > { %806 = vset.pattern.permute.xlu1 %v847_v6  ;;  %807 = vset.pattern.permute.xlu0 %v848_v7 }
  0x21   : > { %223 = vperm.xlu1 %806, %v188_v0   ;;  %295 = vperm.xlu0 %807, %v188_v0  }
  0x25   : > { %231 = vperm.xlu1 %806, %v189_v3   ;;  %810 = vset.pattern.permute.xlu0 %v849_v8 }
  0x26   : > { %319 = vperm.xlu0 %810, %v189_v3  }
  0x29   : > { %808 = vset.pattern.permute.xlu1 %v848_v7 }
  0x2a   : > { %303 = vperm.xlu1 %808, %v189_v3   ;;  %812 = vset.pattern.permute.xlu0 %v850_v9 }
  0x2b   : > { %399 = vperm.xlu0 %812, %v188_v0  }
  0x2e   : > { %809 = vset.pattern.permute.xlu1 %v849_v8 }
  0x2f   : > { %311 = vperm.xlu1 %809, %v188_v0   ;;  %814 = vset.pattern.permute.xlu0 %v845_v4 }
  0x33   : > { %811 = vset.pattern.permute.xlu1 %v851_v10 }
  0x34   : > { %383 = vperm.xlu1 %811, %v188_v0  }
  0x38   : > { %391 = vperm.xlu1 %811, %v189_v3  }
  0x3c   : > { %813 = vset.pattern.permute.xlu1 %v850_v9 }
  0x3d   : > { %407 = vperm.xlu1 %813, %v189_v3  }
  0x89   : > { %v539_v15 = vpop.permute.xlu1 %538  ;;  %v483_v16 = vpop.permute.xlu0 %482 }
  0x8a   : > { %v488_v19 = vrot.slane %v483_v16, %v896_v17  ;;  %v544_v22 = vrot.slane %v539_v15, %v896_v17 }
  0x8d   : > { %v547_v20 = vpop.permute.xlu1 %546  ;;  %v491_v21 = vpop.permute.xlu0 %490 }
  0x8e   : > { %v552_v23 = vrot.slane %v547_v20, %v896_v17  ;;  %v496_v24 = vrot.slane %v491_v21, %v896_v17 }
  0x90   : > { %v555_v26 = vcombine.low %v544_v22, %v552_v23  ;;  %v499_v27 = vcombine.low %v488_v19, %v496_v24  ;;  %v195_v24 = vadd.s32 128, %v194_v18 }
  0x92   : > { %v594_v28 = vpop.permute.xlu1 %593  ;;  %v586_v29 = vpop.permute.xlu0 %585  ;;  %v562_v30 = vrot.slane %v555_v26, %v904_v25  ;;  %v506_v31 = vrot.slane %v499_v27, %v904_v25  ;;  %v197_v35 = vand.u32 1, %v195_v24 }
  0x93   : > { %v599_v32 = vrot.slane %v594_v28, %v896_v17  ;;  %v591_v33 = vrot.slane %v586_v29, %v896_v17  ;;  %v196_v28 = vand.u32 1, %v194_v18 }
  0x94   : > { %v563_v37 = vcombine.high %v562_v30, %v562_v30  ;;  %v507_v39 = vcombine.high %v506_v31, %v506_v31  ;;  %v570_v43 = vrot.slane %v562_v30, %v904_v25  ;;  %v514_v45 = vrot.slane %v506_v31, %v904_v25 }
  0x95   : > { %v602_v40 = vcombine.low %v591_v33, %v599_v32  ;;  %vm958_vm0 = vcmp.eq.s32.totalorder %v196_v28, 0  ;;  %vm968_vm1 = vcmp.eq.s32.totalorder %v197_v35, 0 }
  0x96   : > { %v577_v46 = vrot.slane %v563_v37, %v904_v25  ;;  %v521_v48 = vrot.slane %v507_v39, %v904_v25  ;;  %v580_v52 = vmul.f32 %v570_v43, %v917_v41  ;;  %v524_v53 = vmul.f32 %v514_v45, %v923_v44 }
  0x97   : > { %v207_v36 = vpop.permute.xlu1 %206  ;;  %v609_v49 = vrot.slane %v602_v40, %v904_v25  ;;  %v216_v50 = vpop.permute.xlu0 %215 }
  0x98   : > { %v581_v54 = vmul.f32 %v577_v46, %v919_v42  ;;  %v525_v55 = vmul.f32 %v521_v48, %v927_v47  ;;  %v582_v59 = vadd.f32 %v580_v52, %v524_v53  ;;  %v212_v7 = vrot.slane %v207_v36, %v896_v17 }
  0x99   : > { %v610_v56 = vcombine.high %v609_v49, %v609_v49  ;;  %v617_v60 = vrot.slane %v609_v49, %v904_v25  ;;  %v221_v8 = vrot.slane %v216_v50, %v896_v17 }
  0x9a   : > { %v583_v61 = vadd.f32 %v581_v54, %v525_v55 }
  0x9b   : > { %v624_v62 = vrot.slane %v610_v56, %v904_v25  ;;  %v627_v1 = vadd.f32 %v617_v60, %v582_v59  ;;  %v240_v16 = vcombine.low %v212_v7, %v221_v8 }
  0x9c   : > { %v224_v51 = vpop.permute.xlu1 %223  ;;  %v296_v58 = vpop.permute.xlu0 %295 }
  0x9d   : > { %v628_v2 = vadd.f32 %v624_v62, %v583_v61  ;;  %v301_v5 = vrot.slane %v296_v58, %v896_v17  ;;  %v229_v9 = vrot.slane %v224_v51, %v896_v17  ;;  %815 = vrcp.f32 %v627_v1 }
  0x9e   : > { %v247_v23 = vrot.slane %v240_v16, %v904_v25 }
  0x9f   : > { %817 = vrcp.f32 %v628_v2 }
  0xa0   : > { %v232_v57 = vpop.permute.xlu1 %231  ;;  %v248_v34 = vcombine.high %v247_v23, %v247_v23  ;;  %v255_v45 = vrot.slane %v247_v23, %v904_v25 }
  0xa1   : > { %v320_v0 = vpop.permute.xlu0 %319  ;;  %v237_v3 = vrot.slane %v232_v57, %v896_v17 }
  0xa2   : > { %v325_v6 = vrot.slane %v320_v0, %v896_v17  ;;  %v262_v56 = vrot.slane %v248_v34, %v904_v25 }
  0xa3   : > { %v267_v13 = vcombine.low %v229_v9, %v237_v3 }
  0xa5   : > { %v304_v63 = vpop.permute.xlu1 %303  ;;  %v274_v21 = vrot.slane %v267_v13, %v904_v25 }
  0xa6   : > { %v309_v4 = vrot.slane %v304_v63, %v896_v17  ;;  %v400_v32 = vpop.permute.xlu0 %399 }
  0xa7   : > { %v275_v29 = vcombine.high %v274_v21, %v274_v21  ;;  %v282_v37 = vrot.slane %v274_v21, %v904_v25  ;;  %v405_v40 = vrot.slane %v400_v32, %v896_v17 }
  0xa8   : > { %v328_v14 = vcombine.low %v301_v5, %v309_v4 }
  0xa9   : > { %v289_v48 = vrot.slane %v275_v29, %v904_v25  ;;  %v292_v57 = vsel %vm958_vm0, %v255_v45, %v282_v37 }
  0xaa   : > { %v312_v10 = vpop.permute.xlu1 %311  ;;  %v335_v22 = vrot.slane %v328_v14, %v904_v25  ;;  %v816_v43 = vpop.eup %815  ;;  %v637_v3 = vmul.f32 %v923_v44, %v292_v57 }
  0xab   : > { %v317_v12 = vrot.slane %v312_v10, %v896_v17  ;;  %v631_v60 = vmul.f32 %v816_v43, %v627_v1 }
  0xac   : > { %v336_v11 = vcombine.high %v335_v22, %v335_v22  ;;  %v343_v38 = vrot.slane %v335_v22, %v904_v25  ;;  %v818_v50 = vpop.eup %817 }
  0xad   : > { %v355_v15 = vcombine.low %v317_v12, %v325_v6  ;;  %v632_v61 = vmul.f32 %v818_v50, %v628_v2  ;;  %v633_v1 = vsub.f32 2.0, %v631_v60 }
  0xae   : > { %v350_v51 = vrot.slane %v336_v11, %v904_v25 }
  0xaf   : > { %v362_v19 = vrot.slane %v355_v15, %v904_v25  ;;  %v384_v20 = vpop.permute.xlu1 %383  ;;  %v634_v2 = vsub.f32 2.0, %v632_v61  ;;  %v635_v14 = vmul.f32 %v816_v43, %v633_v1 }
  0xb0   : > { %v389_v30 = vrot.slane %v384_v20, %v896_v17 }
  0xb1   : > { %v363_v26 = vcombine.high %v362_v19, %v362_v19  ;;  %v370_v33 = vrot.slane %v362_v19, %v904_v25  ;;  %v636_v15 = vmul.f32 %v818_v50, %v634_v2 }
  0xb3   : > { %v392_v27 = vpop.permute.xlu1 %391  ;;  %v377_v39 = vrot.slane %v363_v26, %v904_v25  ;;  %v380_v52 = vsel %vm958_vm0, %v343_v38, %v370_v33 }
  0xb4   : > { %v397_v31 = vrot.slane %v392_v27, %v896_v17  ;;  %v639_v62 = vmul.f32 %v917_v41, %v380_v52 }
  0xb5   : > { %v381_v58 = vsel %vm968_vm1, %v350_v51, %v377_v39 }
  0xb6   : > { %v416_v36 = vcombine.low %v389_v30, %v397_v31  ;;  %v640_v4 = vmul.f32 %v919_v42, %v381_v58  ;;  %v641_v8 = vadd.f32 %v639_v62, %v637_v3 }
  0xb8   : > { %v408_v49 = vpop.permute.xlu1 %407  ;;  %v423_v53 = vrot.slane %v416_v36, %v904_v25 }
  0xb9   : > { %v413_v54 = vrot.slane %v408_v49, %v896_v17  ;;  %v293_v17 = vsel %vm968_vm1, %v262_v56, %v289_v48 }
  0xba   : > { %v424_v63 = vcombine.high %v423_v53, %v423_v53  ;;  %v431_v5 = vrot.slane %v423_v53, %v904_v25  ;;  %v638_v41 = vmul.f32 %v927_v47, %v293_v17 }
  0xbb   : > { %v443_v59 = vcombine.low %v405_v40, %v413_v54 }
  0xbc   : > { %v438_v9 = vrot.slane %v424_v63, %v904_v25  ;;  %v642_v12 = vadd.f32 %v640_v4, %v638_v41 }
  0xbd   : > { %v450_v0 = vrot.slane %v443_v59, %v904_v25 }
  0xbf   : > { %v451_v6 = vcombine.high %v450_v0, %v450_v0  ;;  %v458_v7 = vrot.slane %v450_v0, %v904_v25 }
  0xc1   : > { %v465_v10 = vrot.slane %v451_v6, %v904_v25  ;;  %v468_v44 = vsel %vm958_vm0, %v431_v5, %v458_v7 }
  0xc2   : > { %v643_v42 = vadd.f32 %v641_v8, %v468_v44 }
  0xc3   : > { %v469_v13 = vsel %vm968_vm1, %v438_v9, %v465_v10 }
  0xc4   : > { %v644_v16 = vadd.f32 %v642_v12, %v469_v13  ;;  %v645_v18 = vmul.f32 %v643_v42, %v635_v14 }
  0xc6   : > { %v646_v19 = vmul.f32 %v644_v16, %v636_v15 }
  0xc8   : > { %v649_v47 = vcombine.low %v645_v18, %v646_v19 }
  0xca   : > { %763 = vst.sshfl [vmem:[%s186_s24] sm:$0x33 pattern:$0x76325410] %v649_v47 }
  0xcb PF: > { %s12_s11 = sadd.s32 1, %s841_s11   ;;  %s1013_s9 = smov %s837_s10 }
  0xcc   : > { %p9_p5 = scmp.ge.s32.totalorder %s12_s11, 4   ;;  %s1014_s10 = smov %s1016_s12 }
  0xce   :  { %11 = sbr.rel (!%p9_p5) target bundleno = 2 (0x2), region = 62 }

</bundles_post_ra>
